<compile_context>
chip_gen: v7x
topology: tpu7x:2x2x1
jax: 0.10.0
libtpu: 0.0.40
codegen_flags: <defaults>
</compile_context>

<pallas_src>
import functools

import jax
import jax.numpy as jnp
from jax.experimental import pallas as pl
from jax.experimental.pallas import tpu as pltpu

LEAKY_SLOPE = 0.2
MAX_BATCH_TILE = 1024


def _round_up(x, m):
    return ((x + m - 1) // m) * m


def _leaky_relu(x, slope=LEAKY_SLOPE):
    return jnp.where(x > 0, x, slope * x)


def discriminator_kernel(x_ref, w_ref, b_ref, o_ref, *, num_layers, in_size):
    """One batch tile of the full 6-layer MLP.

    x_ref: (tb, in_size) f32    w_ref: (L, F, F) f32 (zero-padded, resident)
    b_ref: (L, 1, F) f32        o_ref: (1, 1, tb) f32 (lane-dense logits)
    """
    tb = x_ref.shape[0]

    # Layer 0: K = in_size, static row-slice of the resident weight stack.
    h = jnp.dot(x_ref[...], w_ref[0, :in_size, :],
                preferred_element_type=jnp.float32) + b_ref[0]
    h = _leaky_relu(h)

    # Hidden layers 1 .. L-2 (static, fully unrolled).
    for i in range(1, num_layers - 1):
        h = jnp.dot(h, w_ref[i], preferred_element_type=jnp.float32) + b_ref[i]
        h = _leaky_relu(h)

    # Final linear (no activation).  Only column 0 of h is the real logit.
    h = jnp.dot(h, w_ref[num_layers - 1],
                preferred_element_type=jnp.float32) + b_ref[num_layers - 1]

    # Relayout the logit column into a lane-dense row (XLU transpose) so the
    # output HBM stream is 4 B per logit instead of 512 B per logit.
    h_t = jnp.transpose(h)                                     # (F, tb)
    o_ref[...] = h_t[0:1, :].reshape(1, 1, tb).astype(o_ref.dtype)


def pack_params(params):
    """One-time, weight-static packing into (L, F, F) / (L, 1, F) stacks."""
    assert params[-1][0].shape[1] == 1, "kernel assumes scalar (logit) output"
    num_layers = len(params)
    dims = [params[0][0].shape[0]] + [w.shape[1] for w, _ in params]
    feat_pad = _round_up(max(dims + [128]), 128)
    w_all = jnp.zeros((num_layers, feat_pad, feat_pad), jnp.float32)
    b_all = jnp.zeros((num_layers, 1, feat_pad), jnp.float32)
    for i, (w, b) in enumerate(params):
        # NOTE: weights follow the (in_features, out_features) convention; real
        # PyTorch nn.Linear weights ((out, in)) must be transposed before packing.
        fi, fo = w.shape
        w_all = w_all.at[i, :fi, :fo].set(w.astype(jnp.float32))
        b_all = b_all.at[i, :, :fo].set(b.reshape(1, fo).astype(jnp.float32))
    return w_all, b_all


def _pick_batch_tile(batch):
    if batch <= 8:
        return _round_up(max(batch, 1), 8)
    # >= 2 grid programs for moderate batches (v7x has 2 TensorCores that only
    # share work along parallel grid axes); 128-multiple keeps the compact
    # output row lane-dense; cap keeps VMEM tiny even under v5e defaults.
    return min(MAX_BATCH_TILE, _round_up(pl.cdiv(batch, 2), 128))


@jax.jit
def discriminator_forward(x, w_all, b_all):
    """x: (B, input_size) f32.  w_all / b_all: pre-packed stacks from pack_params."""
    B, in_size = x.shape
    num_layers = w_all.shape[0]

    x = x.astype(jnp.float32)

    # Keep the first matmul's K a sublane multiple (no-op when in_size % 8 == 0).
    in_pad = _round_up(in_size, 8)
    if in_pad != in_size:
        x = jnp.pad(x, ((0, 0), (0, in_pad - in_size)))

    tb = _pick_batch_tile(B)
    b_pad = _round_up(B, tb)
    if b_pad != B:
        x = jnp.pad(x, ((0, b_pad - B), (0, 0)))
    num_blocks = b_pad // tb

    kernel = functools.partial(
        discriminator_kernel, num_layers=num_layers, in_size=in_pad)

    out = pl.pallas_call(
        kernel,
        out_shape=jax.ShapeDtypeStruct((num_blocks, 1, tb), jnp.float32),
        grid=(num_blocks,),
        in_specs=[
            pl.BlockSpec((tb, in_pad), lambda i: (i, 0)),
            pl.BlockSpec(w_all.shape, lambda i: (0, 0, 0)),   # resident in VMEM
            pl.BlockSpec(b_all.shape, lambda i: (0, 0, 0)),   # resident in VMEM
        ],
        out_specs=pl.BlockSpec((1, 1, tb), lambda i: (i, 0, 0)),
        compiler_params=pltpu.CompilerParams(
            dimension_semantics=("parallel",)),
    )(x, w_all, b_all)

    # (num_blocks, 1, tb) flattens in batch order -> (b_pad, 1) -> (B, 1).
    return out.reshape(b_pad, 1)[:B]


def init_params(key, input_size, hidden_size=16, output_size=1):
    """Deterministic PyTorch-style uniform(-1/sqrt(fan_in), 1/sqrt(fan_in)) init."""
    sizes = [
        (input_size, hidden_size),
        (hidden_size, hidden_size),
        (hidden_size, hidden_size),
        (hidden_size, hidden_size),
        (hidden_size, hidden_size),
        (hidden_size, output_size),
    ]
    params = []
    for (fan_in, fan_out) in sizes:
        key, kw, kb = jax.random.split(key, 3)
        bound = 1.0 / (fan_in ** 0.5)
        w = jax.random.uniform(kw, (fan_in, fan_out), jnp.float32, -bound, bound)
        b = jax.random.uniform(kb, (1, fan_out), jnp.float32, -bound, bound)
        params.append((w, b))
    return params


def reference_forward(x, params):
    h = x
    for i, (w, b) in enumerate(params):
        h = h @ w + b
        if i < len(params) - 1:
            h = jnp.where(h > 0, h, LEAKY_SLOPE * h)
    return h


if __name__ == "__main__":
    key = jax.random.PRNGKey(0)
    k_x, k_p = jax.random.split(key)

    batch = 8
    input_size = 32
    hidden_size = 16
    output_size = 1

    x = jax.random.normal(k_x, (batch, input_size), jnp.float32)
    params = init_params(k_p, input_size, hidden_size, output_size)

    # One-time packing (weight-static), then the jitted forward per step.
    w_all, b_all = pack_params(params)

    y = discriminator_forward(x, w_all, b_all)
    y = jax.block_until_ready(y)

    y_ref = reference_forward(x, params)
    assert y.shape == (batch, output_size)
    assert jnp.allclose(y, y_ref, atol=1e-5, rtol=1e-5)

    print("KERNEL_OK")
</pallas_src>

<mosaic_0001>
module attributes {stable_mosaic.version = 11 : i64} {
  func.func @discriminator_kernel(%arg0: i32, %arg1: memref<8x32xf32, #tpu.memory_space<vmem>>, %arg2: memref<6x128x128xf32, #tpu.memory_space<vmem>>, %arg3: memref<6x1x128xf32, #tpu.memory_space<vmem>>, %arg4: memref<1x1x8xf32, #tpu.memory_space<vmem>>) attributes {dimension_semantics = [#tpu.dimension_semantics<parallel>], iteration_bounds = array<i64: 1>, scalar_prefetch = 0 : i64, scratch_operands = 0 : i64, tpu.core_type = #tpu.core_type<tc>, window_params = [{transform_indices = @transform_0, window_bounds = array<i64: 8, 32>}, {pipeline_mode = #tpu.pipeline_mode<synchronous>, transform_indices = @transform_1, window_bounds = array<i64: 6, 128, 128>}, {pipeline_mode = #tpu.pipeline_mode<synchronous>, transform_indices = @transform_2, window_bounds = array<i64: 6, 1, 128>}, {transform_indices = @transform_3, window_bounds = array<i64: 1, 1, 8>}]} {
    %c0 = arith.constant 0 : index
    %c0_0 = arith.constant 0 : index
    %0 = vector.load %arg1[%c0, %c0_0] : memref<8x32xf32, #tpu.memory_space<vmem>>, vector<8x32xf32>
    %c0_1 = arith.constant 0 : index
    %c0_2 = arith.constant 0 : index
    %c0_3 = arith.constant 0 : index
    %1 = vector.load %arg2[%c0_1, %c0_2, %c0_3] : memref<6x128x128xf32, #tpu.memory_space<vmem>>, vector<1x32x128xf32>
    %2 = vector.shape_cast %1 : vector<1x32x128xf32> to vector<32x128xf32>
    %cst = arith.constant dense<0.000000e+00> : vector<8x128xf32>
    %3 = tpu.matmul %0, %2, %cst {dimension_numbers = #tpu.dot_dimension_numbers<[1], [0], [0], [1], [0, 0, 1, 1], [], []>} : vector<8x32xf32>, vector<32x128xf32>, vector<8x128xf32> -> vector<8x128xf32>
    %c0_4 = arith.constant 0 : index
    %c0_5 = arith.constant 0 : index
    %c0_6 = arith.constant 0 : index
    %4 = vector.load %arg3[%c0_4, %c0_5, %c0_6] : memref<6x1x128xf32, #tpu.memory_space<vmem>>, vector<1x1x128xf32>
    %5 = vector.shape_cast %4 : vector<1x1x128xf32> to vector<1x128xf32>
    %6 = vector.broadcast %5 : vector<1x128xf32> to vector<8x128xf32>
    %7 = arith.addf %3, %6 : vector<8x128xf32>
    %cst_7 = arith.constant 0.000000e+00 : f32
    %8 = vector.broadcast %cst_7 : f32 to vector<8x128xf32>
    %9 = arith.cmpf ogt, %7, %8 : vector<8x128xf32>
    %cst_8 = arith.constant 2.000000e-01 : f32
    %10 = vector.broadcast %cst_8 : f32 to vector<8x128xf32>
    %11 = arith.mulf %10, %7 : vector<8x128xf32>
    %12 = arith.select %9, %7, %11 : vector<8x128xi1>, vector<8x128xf32>
    %c1 = arith.constant 1 : index
    %c0_9 = arith.constant 0 : index
    %c0_10 = arith.constant 0 : index
    %13 = vector.load %arg2[%c1, %c0_9, %c0_10] : memref<6x128x128xf32, #tpu.memory_space<vmem>>, vector<1x128x128xf32>
    %14 = vector.shape_cast %13 : vector<1x128x128xf32> to vector<128x128xf32>
    %cst_11 = arith.constant dense<0.000000e+00> : vector<8x128xf32>
    %15 = tpu.matmul %12, %14, %cst_11 {dimension_numbers = #tpu.dot_dimension_numbers<[1], [0], [0], [1], [0, 0, 1, 1], [], []>} : vector<8x128xf32>, vector<128x128xf32>, vector<8x128xf32> -> vector<8x128xf32>
    %c1_12 = arith.constant 1 : index
    %c0_13 = arith.constant 0 : index
    %c0_14 = arith.constant 0 : index
    %16 = vector.load %arg3[%c1_12, %c0_13, %c0_14] : memref<6x1x128xf32, #tpu.memory_space<vmem>>, vector<1x1x128xf32>
    %17 = vector.shape_cast %16 : vector<1x1x128xf32> to vector<1x128xf32>
    %18 = vector.broadcast %17 : vector<1x128xf32> to vector<8x128xf32>
    %19 = arith.addf %15, %18 : vector<8x128xf32>
    %cst_15 = arith.constant 0.000000e+00 : f32
    %20 = vector.broadcast %cst_15 : f32 to vector<8x128xf32>
    %21 = arith.cmpf ogt, %19, %20 : vector<8x128xf32>
    %cst_16 = arith.constant 2.000000e-01 : f32
    %22 = vector.broadcast %cst_16 : f32 to vector<8x128xf32>
    %23 = arith.mulf %22, %19 : vector<8x128xf32>
    %24 = arith.select %21, %19, %23 : vector<8x128xi1>, vector<8x128xf32>
    %c2 = arith.constant 2 : index
    %c0_17 = arith.constant 0 : index
    %c0_18 = arith.constant 0 : index
    %25 = vector.load %arg2[%c2, %c0_17, %c0_18] : memref<6x128x128xf32, #tpu.memory_space<vmem>>, vector<1x128x128xf32>
    %26 = vector.shape_cast %25 : vector<1x128x128xf32> to vector<128x128xf32>
    %cst_19 = arith.constant dense<0.000000e+00> : vector<8x128xf32>
    %27 = tpu.matmul %24, %26, %cst_19 {dimension_numbers = #tpu.dot_dimension_numbers<[1], [0], [0], [1], [0, 0, 1, 1], [], []>} : vector<8x128xf32>, vector<128x128xf32>, vector<8x128xf32> -> vector<8x128xf32>
    %c2_20 = arith.constant 2 : index
    %c0_21 = arith.constant 0 : index
    %c0_22 = arith.constant 0 : index
    %28 = vector.load %arg3[%c2_20, %c0_21, %c0_22] : memref<6x1x128xf32, #tpu.memory_space<vmem>>, vector<1x1x128xf32>
    %29 = vector.shape_cast %28 : vector<1x1x128xf32> to vector<1x128xf32>
    %30 = vector.broadcast %29 : vector<1x128xf32> to vector<8x128xf32>
    %31 = arith.addf %27, %30 : vector<8x128xf32>
    %cst_23 = arith.constant 0.000000e+00 : f32
    %32 = vector.broadcast %cst_23 : f32 to vector<8x128xf32>
    %33 = arith.cmpf ogt, %31, %32 : vector<8x128xf32>
    %cst_24 = arith.constant 2.000000e-01 : f32
    %34 = vector.broadcast %cst_24 : f32 to vector<8x128xf32>
    %35 = arith.mulf %34, %31 : vector<8x128xf32>
    %36 = arith.select %33, %31, %35 : vector<8x128xi1>, vector<8x128xf32>
    %c3 = arith.constant 3 : index
    %c0_25 = arith.constant 0 : index
    %c0_26 = arith.constant 0 : index
    %37 = vector.load %arg2[%c3, %c0_25, %c0_26] : memref<6x128x128xf32, #tpu.memory_space<vmem>>, vector<1x128x128xf32>
    %38 = vector.shape_cast %37 : vector<1x128x128xf32> to vector<128x128xf32>
    %cst_27 = arith.constant dense<0.000000e+00> : vector<8x128xf32>
    %39 = tpu.matmul %36, %38, %cst_27 {dimension_numbers = #tpu.dot_dimension_numbers<[1], [0], [0], [1], [0, 0, 1, 1], [], []>} : vector<8x128xf32>, vector<128x128xf32>, vector<8x128xf32> -> vector<8x128xf32>
    %c3_28 = arith.constant 3 : index
    %c0_29 = arith.constant 0 : index
    %c0_30 = arith.constant 0 : index
    %40 = vector.load %arg3[%c3_28, %c0_29, %c0_30] : memref<6x1x128xf32, #tpu.memory_space<vmem>>, vector<1x1x128xf32>
    %41 = vector.shape_cast %40 : vector<1x1x128xf32> to vector<1x128xf32>
    %42 = vector.broadcast %41 : vector<1x128xf32> to vector<8x128xf32>
    %43 = arith.addf %39, %42 : vector<8x128xf32>
    %cst_31 = arith.constant 0.000000e+00 : f32
    %44 = vector.broadcast %cst_31 : f32 to vector<8x128xf32>
    %45 = arith.cmpf ogt, %43, %44 : vector<8x128xf32>
    %cst_32 = arith.constant 2.000000e-01 : f32
    %46 = vector.broadcast %cst_32 : f32 to vector<8x128xf32>
    %47 = arith.mulf %46, %43 : vector<8x128xf32>
    %48 = arith.select %45, %43, %47 : vector<8x128xi1>, vector<8x128xf32>
    %c4 = arith.constant 4 : index
    %c0_33 = arith.constant 0 : index
    %c0_34 = arith.constant 0 : index
    %49 = vector.load %arg2[%c4, %c0_33, %c0_34] : memref<6x128x128xf32, #tpu.memory_space<vmem>>, vector<1x128x128xf32>
    %50 = vector.shape_cast %49 : vector<1x128x128xf32> to vector<128x128xf32>
    %cst_35 = arith.constant dense<0.000000e+00> : vector<8x128xf32>
    %51 = tpu.matmul %48, %50, %cst_35 {dimension_numbers = #tpu.dot_dimension_numbers<[1], [0], [0], [1], [0, 0, 1, 1], [], []>} : vector<8x128xf32>, vector<128x128xf32>, vector<8x128xf32> -> vector<8x128xf32>
    %c4_36 = arith.constant 4 : index
    %c0_37 = arith.constant 0 : index
    %c0_38 = arith.constant 0 : index
    %52 = vector.load %arg3[%c4_36, %c0_37, %c0_38] : memref<6x1x128xf32, #tpu.memory_space<vmem>>, vector<1x1x128xf32>
    %53 = vector.shape_cast %52 : vector<1x1x128xf32> to vector<1x128xf32>
    %54 = vector.broadcast %53 : vector<1x128xf32> to vector<8x128xf32>
    %55 = arith.addf %51, %54 : vector<8x128xf32>
    %cst_39 = arith.constant 0.000000e+00 : f32
    %56 = vector.broadcast %cst_39 : f32 to vector<8x128xf32>
    %57 = arith.cmpf ogt, %55, %56 : vector<8x128xf32>
    %cst_40 = arith.constant 2.000000e-01 : f32
    %58 = vector.broadcast %cst_40 : f32 to vector<8x128xf32>
    %59 = arith.mulf %58, %55 : vector<8x128xf32>
    %60 = arith.select %57, %55, %59 : vector<8x128xi1>, vector<8x128xf32>
    %c5 = arith.constant 5 : index
    %c0_41 = arith.constant 0 : index
    %c0_42 = arith.constant 0 : index
    %61 = vector.load %arg2[%c5, %c0_41, %c0_42] : memref<6x128x128xf32, #tpu.memory_space<vmem>>, vector<1x128x128xf32>
    %62 = vector.shape_cast %61 : vector<1x128x128xf32> to vector<128x128xf32>
    %cst_43 = arith.constant dense<0.000000e+00> : vector<8x128xf32>
    %63 = tpu.matmul %60, %62, %cst_43 {dimension_numbers = #tpu.dot_dimension_numbers<[1], [0], [0], [1], [0, 0, 1, 1], [], []>} : vector<8x128xf32>, vector<128x128xf32>, vector<8x128xf32> -> vector<8x128xf32>
    %c5_44 = arith.constant 5 : index
    %c0_45 = arith.constant 0 : index
    %c0_46 = arith.constant 0 : index
    %64 = vector.load %arg3[%c5_44, %c0_45, %c0_46] : memref<6x1x128xf32, #tpu.memory_space<vmem>>, vector<1x1x128xf32>
    %65 = vector.shape_cast %64 : vector<1x1x128xf32> to vector<1x128xf32>
    %66 = vector.broadcast %65 : vector<1x128xf32> to vector<8x128xf32>
    %67 = arith.addf %63, %66 : vector<8x128xf32>
    %68 = tpu.transpose %67, [1, 0] : vector<8x128xf32> -> vector<128x8xf32>
    %69 = vector.extract_strided_slice %68 {offsets = [0, 0], sizes = [1, 8], strides = [1, 1]} : vector<128x8xf32> to vector<1x8xf32>
    %70 = vector.shape_cast %69 : vector<1x8xf32> to vector<1x1x8xf32>
    %c0_47 = arith.constant 0 : index
    %c0_48 = arith.constant 0 : index
    %c0_49 = arith.constant 0 : index
    %71 = vector.load %arg4[%c0_47, %c0_48, %c0_49] : memref<1x1x8xf32, #tpu.memory_space<vmem>>, vector<1x1x8xf32>
    tpu.vector_store %arg4[%c0_47, %c0_48, %c0_49], %70 {strides = array<i32>} : memref<1x1x8xf32, #tpu.memory_space<vmem>>, vector<1x1x8xf32>,
    return
  }
  func.func @transform_0(%arg0: i32) -> (i32, i32) {
    %c0_i32 = arith.constant 0 : i32
    %c0_i32_0 = arith.constant 0 : i32
    return %arg0, %c0_i32 : i32, i32
  }
  func.func @transform_1(%arg0: i32) -> (i32, i32, i32) {
    %c0_i32 = arith.constant 0 : i32
    %c0_i32_0 = arith.constant 0 : i32
    %c0_i32_1 = arith.constant 0 : i32
    %c0_i32_2 = arith.constant 0 : i32
    return %c0_i32, %c0_i32_0, %c0_i32_1 : i32, i32, i32
  }
  func.func @transform_2(%arg0: i32) -> (i32, i32, i32) {
    %c0_i32 = arith.constant 0 : i32
    %c0_i32_0 = arith.constant 0 : i32
    %c0_i32_1 = arith.constant 0 : i32
    %c0_i32_2 = arith.constant 0 : i32
    return %c0_i32, %c0_i32_0, %c0_i32_1 : i32, i32, i32
  }
  func.func @transform_3(%arg0: i32) -> (i32, i32, i32) {
    %c0_i32 = arith.constant 0 : i32
    %c0_i32_0 = arith.constant 0 : i32
    %c0_i32_1 = arith.constant 0 : i32
    return %arg0, %c0_i32, %c0_i32_0 : i32, i32, i32
  }
}

</mosaic_0001>

<bundles_post_ra>
// kernel: discriminator_forward.1
= control target key start
LH: loop header
LB: loop body
LE: loop exit
PB: predicated region body
PF: predicated region fallthrough
CT: control target
= control target key end

     0   :  { %8 = vsyncpa [#allocation3], 0  ;;  %s1304_s0 = inlined_call_operand.hbm [shape: f32[8,32], index: 0, kind: input, shape index: {}]   ;;  %s1305_s1 = inlined_call_operand.hbm [shape: f32[6,128,128], index: 1, kind: input, shape index: {}]   ;;  %s1306_s2 = inlined_call_operand.vmem [shape: f32[6,1,128], index: 2, kind: input, shape index: {}]   ;;  %s1307_s3 = inlined_call_operand.hbm [shape: f32[1,1,8], index: 3, kind: output, shape index: {}]  }
   0x1   :  { %9 = vsyncpa [#allocation6], 0 }
   0x2   :  { %10 = vsyncpa [#allocation4], 0  ;;  %s1161_s12 = smov [#allocation2]   ;;  %s1162_s14 = smov [#allocation5]  }
   0x3   :  { %s17_s13 = sshll.u32 %s1161_s12, 4  ;;  %s26_s15 = sshll.u32 %s1162_s14, 4  ;;  %s18_s13 = int_to_ptr.vmem [resolvable:$true] %s17_s13  ;;  %s1189_s15 = int_to_ptr.vmem [resolvable:$true] %s26_s15 }
   0x4   :  { %s1089_s18 = scalar_lea.hbm %s1304_s0, 128 }
   0x5   :  { %p1090_p0 = scmp.ne.s32.totalorder %s1304_s0, %s1089_s18  ;;  %p1093_p1 = scmp.lt.u32.totalorder %s1089_s18, %s1304_s0 }
   0x7   :  { %p1095_p2 = pnand %p1093_p1, %p1090_p0 }
   0x9   :  { %1098 = shalt.err (!%p1095_p2)
}
   0xa   :  { %s1099_s23 = scalar_lea.vmem %s18_s13, 128  ;;  %p1104_p4 = scmp.lt.s32.totalorder %s18_s13, %s18_s13 }
   0xb   :  { %p1100_p3 = scmp.ne.s32.totalorder %s18_s13, %s1099_s23  ;;  %p1105_p5 = scmp.lt.s32.totalorder %s1099_s23, %s1099_s23 }
   0xd   :  { %p1106_p6 = por %p1105_p5, %p1104_p4 }
   0xf   :  { %p1107_p7 = pnand %p1106_p6, %p1100_p3 }
  0x11   :  { %1110 = shalt.err (!%p1107_p7)
}
  0x12   :  { %20 = dma.hbm_to_vmem [thread:$0]  %s1304_s0, 128, %s18_s13, [#allocation3]  }
  0x13   :  { %s1111_s28 = scalar_lea.hbm %s1305_s1, 12288 }
  0x14   :  { %p1112_p8 = scmp.ne.s32.totalorder %s1305_s1, %s1111_s28  ;;  %p1115_p9 = scmp.lt.u32.totalorder %s1111_s28, %s1305_s1 }
  0x16   :  { %p1117_p10 = pnand %p1115_p9, %p1112_p8 }
  0x18   :  { %1120 = shalt.err (!%p1117_p10)
}
  0x19   :  { %s1121_s6 = scalar_lea.vmem %s1189_s15, 12288  ;;  %p1126_p12 = scmp.lt.s32.totalorder %s1189_s15, %s1189_s15 }
  0x1a   :  { %p1122_p11 = scmp.ne.s32.totalorder %s1189_s15, %s1121_s6  ;;  %p1127_p13 = scmp.lt.s32.totalorder %s1121_s6, %s1121_s6 }
  0x1c   :  { %p1128_p0 = por %p1127_p13, %p1126_p12 }
  0x1e   :  { %p1129_p1 = pnand %p1128_p0, %p1122_p11 }
  0x20   :  { %1132 = shalt.err (!%p1129_p1)
}
  0x21   :  { %s1163_s0 = smov 128   ;;  %s1164_s7 = smov 8  }
  0x22   :  { %32 = dma.hbm_to_vmem [thread:$0]  %s1305_s1, 12288, %s1189_s15, [#allocation6], %s1163_s0, %s1163_s0, %s1164_s7  }
  0x23   :  { %1155 = dma.done.wait [#allocation3], 128  }
  0x24   :  { %1156 = vsyncadd [#allocation3], 4294967168 }
  0x25   :  { %1157 = dma.done.wait [#allocation6], 12288  }
  0x26   :  { %1158 = vsyncadd [#allocation6], 4294955008  ;;  %v1165_v0 = vmov 0.0|0.0   ;;  %vm1166_vm0 = vmmov 0   ;;  %v1167_v1 = vmov 0.0   ;;  %v42_v2 = vld [vmem:[#allocation5] sm:$0xff] }
  0x27   :  { %955 = vmatprep.subr.bf16.mxu0 %v1165_v0  ;;  %777 = vmatprep.mubr.msk.f32.mxu0 %vm1166_vm0, %v1167_v1  ;;  %v43_v3 = vld [vmem:[#allocation5 + $0x8] sm:$0xff]  ;;  %v44_v4 = vld [vmem:[#allocation5 + $0x10] sm:$0xff]  ;;  %v45_v6 = vld [vmem:[#allocation5 + $0x18] sm:$0xff]  ;;  %vm53_vm1 = vcmask 261120   ;;  %s1168_s21 = smov [#allocation7]   ;;  %vm649_vm7 = vcmask 57344  }
  0x28   :  { %961 = vmatprep.subr.bf16.mxu1 %v1165_v0  ;;  %812 = vmatprep.mubr.msk.f32.mxu1 %vm1166_vm0, %v1167_v1  ;;  %v956_v5 = vpack.c.bf16 %v43_v3, %v42_v2  ;;  %v131_v7 = vld [vmem:[#allocation5 + $0x80] sm:$0xff]  ;;  %v132_v8 = vld [vmem:[#allocation5 + $0x88] sm:$0xff]  ;;  %v133_v9 = vld [vmem:[#allocation5 + $0x90] sm:$0xff]  ;;  %v959_v11 = vpack.c.bf16 %v45_v6, %v44_v4  ;;  %s657_s22 = sshll.u32 %s1168_s21, 4  ;;  %s658_s22 = int_to_ptr.vmem [resolvable:$true] %s657_s22 }
  0x29   :  { %v134_v10 = vld [vmem:[#allocation5 + $0x98] sm:$0xff]  ;;  %v962_v12 = vpack.c.bf16 %v132_v8, %v131_v7  ;;  %v135_v14 = vld [vmem:[#allocation5 + $0xa0] sm:$0xff]  ;;  %v136_v15 = vld [vmem:[#allocation5 + $0xa8] sm:$0xff]  ;;  %s1133_s23 = scalar_lea.vmem %s658_s22, 16  ;;  %s1137_s24 = scalar_lea.vmem %s658_s22, 32 }
  0x2a   :  { %957 = vmatpush3.bf16.msra.mxu0 %v956_v5  ;;  %v965_v13 = vpack.c.bf16 %v134_v10, %v133_v9  ;;  %v41_v16 = vld [vmem:[#allocation2] sm:$0xff]  ;;  %v968_v17 = vpack.c.bf16 %v136_v15, %v135_v14  ;;  %v137_v18 = vld [vmem:[#allocation5 + $0xb0] sm:$0xff]  ;;  %v139_v21 = vld [vmem:[#allocation5 + $0xc0] sm:$0xff]  ;;  %p1134_p2 = scmp.ne.s32.totalorder %s658_s22, %s1133_s23  ;;  %p1138_p3 = scmp.lt.s32.totalorder %s658_s22, %s658_s22 }
  0x2b   :  { %958 = vmatprep.subr.bf16.mxu0 %v1165_v0  ;;  %963 = vmatpush3.bf16.msra.mxu1 %v962_v12  ;;  %v138_v19 = vld [vmem:[#allocation5 + $0xb8] sm:$0xff]  ;;  %v140_v22 = vld [vmem:[#allocation5 + $0xc8] sm:$0xff]  ;;  %v141_v24 = vld [vmem:[#allocation5 + $0xd0] sm:$0xff]  ;;  %p1139_p4 = scmp.lt.s32.totalorder %s1137_s24, %s1133_s23 }
  0x2c   :  { %964 = vmatprep.subr.bf16.mxu1 %v1165_v0  ;;  %v971_v20 = vpack.c.bf16 %v138_v19, %v137_v18  ;;  %v974_v23 = vpack.c.bf16 %v140_v22, %v139_v21  ;;  %v142_v25 = vld [vmem:[#allocation5 + $0xd8] sm:$0xff]  ;;  %v143_v27 = vld [vmem:[#allocation5 + $0xe0] sm:$0xff]  ;;  %v144_v28 = vld [vmem:[#allocation5 + $0xe8] sm:$0xff] }
  0x2d   :  { %v977_v26 = vpack.c.bf16 %v142_v25, %v141_v24  ;;  %v980_v29 = vpack.c.bf16 %v144_v28, %v143_v27  ;;  %v145_v30 = vld [vmem:[#allocation5 + $0xf0] sm:$0xff]  ;;  %v146_v31 = vld [vmem:[#allocation5 + $0xf8] sm:$0xff]  ;;  %v229_v33 = vld [vmem:[#allocation5 + $0x100] sm:$0xff]  ;;  %p1140_p5 = por %p1139_p4, %p1138_p3 }
  0x2e   :  { %960 = vmatpush3.bf16.msra.mxu0 %v959_v11  ;;  %v983_v32 = vpack.c.bf16 %v146_v31, %v145_v30  ;;  %v230_v34 = vld [vmem:[#allocation5 + $0x108] sm:$0xff]  ;;  %v231_v35 = vld [vmem:[#allocation5 + $0x110] sm:$0xff]  ;;  %v232_v37 = vld [vmem:[#allocation5 + $0x118] sm:$0xff] }
  0x2f   :  { %985 = vmatprep.subr.bf16.mxu0 %v1165_v0  ;;  %966 = vmatpush3.bf16.msra.mxu1 %v965_v13  ;;  %v986_v36 = vpack.c.bf16 %v230_v34, %v229_v33  ;;  %v989_v38 = vpack.c.bf16 %v232_v37, %v231_v35  ;;  %v233_v39 = vld [vmem:[#allocation5 + $0x120] sm:$0xff]  ;;  %v234_v40 = vld [vmem:[#allocation5 + $0x128] sm:$0xff]  ;;  %v235_v42 = vld [vmem:[#allocation5 + $0x130] sm:$0xff]  ;;  %p1141_p6 = pnand %p1140_p5, %p1134_p2 }
  0x30   :  { %967 = vmatprep.subr.bf16.mxu1 %v1165_v0  ;;  %v992_v41 = vpack.c.bf16 %v234_v40, %v233_v39  ;;  %v236_v43 = vld [vmem:[#allocation5 + $0x138] sm:$0xff]  ;;  %v237_v45 = vld [vmem:[#allocation5 + $0x140] sm:$0xff]  ;;  %v238_v46 = vld [vmem:[#allocation5 + $0x148] sm:$0xff] }
  0x31   :  { %778 = vmatmul.mubr.msk.f32.vlgmr.msra.gmra.mrb[0].mxu0 %vm53_vm1, %v41_v16  ;;  %v995_v44 = vpack.c.bf16 %v236_v43, %v235_v42  ;;  %v998_v47 = vpack.c.bf16 %v238_v46, %v237_v45  ;;  %v239_v48 = vld [vmem:[#allocation5 + $0x150] sm:$0xff]  ;;  %v240_v49 = vld [vmem:[#allocation5 + $0x158] sm:$0xff]  ;;  %v241_v51 = vld [vmem:[#allocation5 + $0x160] sm:$0xff] }
  0x32   :  { %847 = vmatprep.mubr.msk.f32.mxu0 %vm1166_vm0, %v1167_v1  ;;  %987 = vmatpush3.bf16.msra.mxu0 %v986_v36  ;;  %v1001_v50 = vpack.c.bf16 %v240_v49, %v239_v48  ;;  %v242_v52 = vld [vmem:[#allocation5 + $0x168] sm:$0xff]  ;;  %v667_v54 = vld [vmem:[%s1306_s2] ss:$0 sm:$0xff]  ;;  %v243_v60 = vld [vmem:[#allocation5 + $0x170] sm:$0xff] }
  0x33   :  { %969 = vmatpush3.bf16.msra.mxu1 %v968_v17  ;;  %988 = vmatprep.subr.bf16.mxu0 %v1165_v0  ;;  %v1004_v53 = vpack.c.bf16 %v242_v52, %v241_v51  ;;  %v244_v61 = vld [vmem:[#allocation5 + $0x178] sm:$0xff]  ;;  %v327_v63 = vld [vmem:[#allocation5 + $0x180] sm:$0xff]  ;;  %v328_v2 = vld [vmem:[#allocation5 + $0x188] sm:$0xff] }
  0x34   :  { %970 = vmatprep.subr.bf16.mxu1 %v1165_v0  ;;  %v1007_v62 = vpack.c.bf16 %v244_v61, %v243_v60  ;;  %v329_v3 = vld [vmem:[#allocation5 + $0x190] sm:$0xff]  ;;  %v1010_v4 = vpack.c.bf16 %v328_v2, %v327_v63  ;;  %v330_v5 = vld [vmem:[#allocation5 + $0x198] sm:$0xff]  ;;  %v331_v7 = vld [vmem:[#allocation5 + $0x1a0] sm:$0xff] }
  0x35   :  { %v1013_v6 = vpack.c.bf16 %v330_v5, %v329_v3  ;;  %v332_v8 = vld [vmem:[#allocation5 + $0x1a8] sm:$0xff]  ;;  %v333_v10 = vld [vmem:[#allocation5 + $0x1b0] sm:$0xff]  ;;  %v334_v11 = vld [vmem:[#allocation5 + $0x1b8] sm:$0xff] }
  0x36   :  { %990 = vmatpush3.bf16.msra.mxu0 %v989_v38  ;;  %v1016_v9 = vpack.c.bf16 %v332_v8, %v331_v7  ;;  %v1019_v12 = vpack.c.bf16 %v334_v11, %v333_v10  ;;  %v335_v13 = vld [vmem:[#allocation5 + $0x1c0] sm:$0xff]  ;;  %v336_v14 = vld [vmem:[#allocation5 + $0x1c8] sm:$0xff]  ;;  %v337_v16 = vld [vmem:[#allocation5 + $0x1d0] sm:$0xff] }
  0x37   :  { %972 = vmatpush3.bf16.msra.mxu1 %v971_v20  ;;  %991 = vmatprep.subr.bf16.mxu0 %v1165_v0  ;;  %v1022_v15 = vpack.c.bf16 %v336_v14, %v335_v13  ;;  %v338_v17 = vld [vmem:[#allocation5 + $0x1d8] sm:$0xff]  ;;  %v339_v19 = vld [vmem:[#allocation5 + $0x1e0] sm:$0xff]  ;;  %v340_v20 = vld [vmem:[#allocation5 + $0x1e8] sm:$0xff] }
  0x38   :  { %973 = vmatprep.subr.bf16.mxu1 %v1165_v0  ;;  %v1025_v18 = vpack.c.bf16 %v338_v17, %v337_v16  ;;  %v1028_v21 = vpack.c.bf16 %v340_v20, %v339_v19  ;;  %v670_v22 = vld [vmem:[%s1306_s2 + $0x1] ss:$0 sm:$0xff]  ;;  %v341_v28 = vld [vmem:[#allocation5 + $0x1f0] sm:$0xff]  ;;  %v425_v31 = vld [vmem:[#allocation5 + $0x200] sm:$0xff] }
  0x39   :  { %v427_v33 = vld [vmem:[#allocation5 + $0x210] sm:$0xff]  ;;  %v428_v35 = vld [vmem:[#allocation5 + $0x218] sm:$0xff]  ;;  %v429_v37 = vld [vmem:[#allocation5 + $0x220] sm:$0xff] }
  0x3a   :  { %993 = vmatpush3.bf16.msra.mxu0 %v992_v41  ;;  %v1037_v36 = vpack.c.bf16 %v428_v35, %v427_v33  ;;  %v430_v38 = vld [vmem:[#allocation5 + $0x228] sm:$0xff]  ;;  %v431_v40 = vld [vmem:[#allocation5 + $0x230] sm:$0xff]  ;;  %v432_v41 = vld [vmem:[#allocation5 + $0x238] sm:$0xff] }
  0x3b   :  { %975 = vmatpush3.bf16.msra.mxu1 %v974_v23  ;;  %994 = vmatprep.subr.bf16.mxu0 %v1165_v0  ;;  %v1040_v39 = vpack.c.bf16 %v430_v38, %v429_v37  ;;  %v1043_v42 = vpack.c.bf16 %v432_v41, %v431_v40  ;;  %v433_v43 = vld [vmem:[#allocation5 + $0x240] sm:$0xff]  ;;  %v435_v46 = vld [vmem:[#allocation5 + $0x250] sm:$0xff]  ;;  %v672_v52 = vld [vmem:[%s1306_s2 + $0x2] ss:$0 sm:$0xff] }
  0x3c   :  { %976 = vmatprep.subr.bf16.mxu1 %v1165_v0  ;;  %v437_v49 = vld [vmem:[#allocation5 + $0x260] sm:$0xff]  ;;  %v525_v63 = vld [vmem:[#allocation5 + $0x290] sm:$0xff]  ;;  %v526_v3 = vld [vmem:[#allocation5 + $0x298] sm:$0xff] }
  0x3d   :  { %v523_v61 = vld [vmem:[#allocation5 + $0x280] sm:$0xff]  ;;  %v530_v8 = vld [vmem:[#allocation5 + $0x2b8] sm:$0xff]  ;;  %v532_v11 = vld [vmem:[#allocation5 + $0x2c8] sm:$0xff] }
  0x3e   :  { %996 = vmatpush3.bf16.msra.mxu0 %v995_v44  ;;  %v434_v44 = vld [vmem:[#allocation5 + $0x248] sm:$0xff]  ;;  %v527_v5 = vld [vmem:[#allocation5 + $0x2a0] sm:$0xff]  ;;  %v533_v13 = vld [vmem:[#allocation5 + $0x2d0] sm:$0xff] }
  0x3f   :  { %978 = vmatpush3.bf16.msra.mxu1 %v977_v26  ;;  %997 = vmatprep.subr.bf16.mxu0 %v1165_v0  ;;  %v1046_v45 = vpack.c.bf16 %v434_v44, %v433_v43  ;;  %v531_v10 = vld [vmem:[#allocation5 + $0x2c0] sm:$0xff]  ;;  %v534_v14 = vld [vmem:[#allocation5 + $0x2d8] sm:$0xff]  ;;  %v536_v17 = vld [vmem:[#allocation5 + $0x2e8] sm:$0xff] }
  0x40   :  { %979 = vmatprep.subr.bf16.mxu1 %v1165_v0  ;;  %v535_v16 = vld [vmem:[#allocation5 + $0x2e0] sm:$0xff]  ;;  %v674_v19 = vld [vmem:[%s1306_s2 + $0x3] ss:$0 sm:$0xff]  ;;  %v678_v33 = vld [vmem:[%s1306_s2 + $0x5] ss:$0 sm:$0xff] }
  0x42   :  { %999 = vmatpush3.bf16.msra.mxu0 %v998_v47  ;;  %v436_v47 = vld [vmem:[#allocation5 + $0x258] sm:$0xff] }
  0x43   :  { %981 = vmatpush3.bf16.msra.mxu1 %v980_v29  ;;  %1000 = vmatprep.subr.bf16.mxu0 %v1165_v0  ;;  %v342_v29 = vld [vmem:[#allocation5 + $0x1f8] sm:$0xff]  ;;  %v1049_v48 = vpack.c.bf16 %v436_v47, %v435_v46 }
  0x44   :  { %982 = vmatprep.subr.bf16.mxu1 %v1165_v0  ;;  %v1031_v30 = vpack.c.bf16 %v342_v29, %v341_v28  ;;  %v676_v28 = vld [vmem:[%s1306_s2 + $0x4] ss:$0 sm:$0xff] }
  0x46   :  { %1002 = vmatpush3.bf16.msra.mxu0 %v1001_v50  ;;  %v438_v50 = vld [vmem:[#allocation5 + $0x268] sm:$0xff] }
  0x47   :  { %984 = vmatpush3.bf16.msra.mxu1 %v983_v32  ;;  %1003 = vmatprep.subr.bf16.mxu0 %v1165_v0  ;;  %v426_v32 = vld [vmem:[#allocation5 + $0x208] sm:$0xff]  ;;  %v1052_v51 = vpack.c.bf16 %v438_v50, %v437_v49 }
  0x48   :  { %1009 = vmatprep.subr.bf16.mxu1 %v1165_v0  ;;  %v1034_v34 = vpack.c.bf16 %v426_v32, %v425_v31 }
  0x4a   :  { %1005 = vmatpush3.bf16.msra.mxu0 %v1004_v53 }
  0x4b   :  { %1006 = vmatprep.subr.bf16.mxu0 %v1165_v0 }
  0x4e   :  { %1008 = vmatpush3.bf16.msra.mxu0 %v1007_v62  ;;  %v524_v62 = vld [vmem:[#allocation5 + $0x288] sm:$0xff] }
  0x4f   :  { %1033 = vmatprep.subr.bf16.mxu0 %v1165_v0  ;;  %v1058_v2 = vpack.c.bf16 %v524_v62, %v523_v61 }
 0x104   :  { %v123_v55 = vpop.f32.mrb[0].mxu0 }
 0x105   :  { %v124_v56 = vadd.f32 %v667_v54, %v123_v55  ;;  %v779_v57 = vpop.f32.mrb[1].mxu0 }
 0x107   :  { %v128_v58 = vmul.f32 0.2, %v124_v56  ;;  %vm127_vm2 = vcmp.gt.f32.partialorder %v124_v56, 0.0 }
 0x109   :  { %v129_v59 = vsel %vm127_vm2, %v124_v56, %v128_v58  ;;  %v439_v58 = vld [vmem:[#allocation5 + $0x270] sm:$0xff] }
 0x10a   :  { %813 = vmatmul.mubr.f32.vlgmr.msra.gmra.mrb[0].mxu1 %v129_v59  ;;  %v440_v59 = vld [vmem:[#allocation5 + $0x278] sm:$0xff] }
 0x10b   :  { %882 = vmatprep.mubr.msk.f32.mxu1 %vm1166_vm0, %v1167_v1  ;;  %1011 = vmatpush3.bf16.msra.mxu1 %v1010_v4  ;;  %v1055_v60 = vpack.c.bf16 %v440_v59, %v439_v58  ;;  %v1061_v4 = vpack.c.bf16 %v526_v3, %v525_v63 }
 0x10c   :  { %1012 = vmatprep.subr.bf16.mxu1 %v1165_v0 }
 0x10f   :  { %1014 = vmatpush3.bf16.msra.mxu1 %v1013_v6  ;;  %v528_v6 = vld [vmem:[#allocation5 + $0x2a8] sm:$0xff] }
 0x110   :  { %1015 = vmatprep.subr.bf16.mxu1 %v1165_v0  ;;  %v1064_v7 = vpack.c.bf16 %v528_v6, %v527_v5 }
 0x113   :  { %1017 = vmatpush3.bf16.msra.mxu1 %v1016_v9 }
 0x114   :  { %1018 = vmatprep.subr.bf16.mxu1 %v1165_v0 }
 0x117   :  { %1020 = vmatpush3.bf16.msra.mxu1 %v1019_v12  ;;  %v1070_v12 = vpack.c.bf16 %v532_v11, %v531_v10 }
 0x118   :  { %1021 = vmatprep.subr.bf16.mxu1 %v1165_v0 }
 0x11b   :  { %1023 = vmatpush3.bf16.msra.mxu1 %v1022_v15  ;;  %v1073_v15 = vpack.c.bf16 %v534_v14, %v533_v13 }
 0x11c   :  { %1024 = vmatprep.subr.bf16.mxu1 %v1165_v0 }
 0x11f   :  { %1026 = vmatpush3.bf16.msra.mxu1 %v1025_v18  ;;  %v1076_v18 = vpack.c.bf16 %v536_v17, %v535_v16 }
 0x120   :  { %1027 = vmatprep.subr.bf16.mxu1 %v1165_v0 }
 0x123   :  { %1029 = vmatpush3.bf16.msra.mxu1 %v1028_v21 }
 0x124   :  { %1030 = vmatprep.subr.bf16.mxu1 %v1165_v0 }
 0x127   :  { %1032 = vmatpush3.bf16.msra.mxu1 %v1031_v30 }
 0x128   :  { %1057 = vmatprep.subr.bf16.mxu1 %v1165_v0 }
 0x1dd   :  { %v221_v23 = vpop.f32.mrb[0].mxu1 }
 0x1de   :  { %v222_v24 = vadd.f32 %v670_v22, %v221_v23  ;;  %v814_v25 = vpop.f32.mrb[1].mxu1 }
 0x1df   :  { %v537_v25 = vld [vmem:[#allocation5 + $0x2f0] sm:$0xff] }
 0x1e0   :  { %vm225_vm3 = vcmp.gt.f32.partialorder %v222_v24, 0.0  ;;  %v226_v26 = vmul.f32 0.2, %v222_v24 }
 0x1e2   :  { %v227_v27 = vsel %vm225_vm3, %v222_v24, %v226_v26  ;;  %v538_v26 = vld [vmem:[#allocation5 + $0x2f8] sm:$0xff] }
 0x1e3   :  { %848 = vmatmul.mubr.f32.vlgmr.msra.gmra.mrb[2].mxu0 %v227_v27  ;;  %v1079_v27 = vpack.c.bf16 %v538_v26, %v537_v25 }
 0x1e4   :  { %917 = vmatprep.mubr.msk.f32.mxu0 %vm1166_vm0, %v1167_v1  ;;  %1035 = vmatpush3.bf16.msra.mxu0 %v1034_v34 }
 0x1e5   :  { %1036 = vmatprep.subr.bf16.mxu0 %v1165_v0 }
 0x1e8   :  { %1038 = vmatpush3.bf16.msra.mxu0 %v1037_v36 }
 0x1e9   :  { %1039 = vmatprep.subr.bf16.mxu0 %v1165_v0 }
 0x1ec   :  { %1041 = vmatpush3.bf16.msra.mxu0 %v1040_v39 }
 0x1ed   :  { %1042 = vmatprep.subr.bf16.mxu0 %v1165_v0 }
 0x1f0   :  { %1044 = vmatpush3.bf16.msra.mxu0 %v1043_v42 }
 0x1f1   :  { %1045 = vmatprep.subr.bf16.mxu0 %v1165_v0 }
 0x1f4   :  { %1047 = vmatpush3.bf16.msra.mxu0 %v1046_v45 }
 0x1f5   :  { %1048 = vmatprep.subr.bf16.mxu0 %v1165_v0 }
 0x1f8   :  { %1050 = vmatpush3.bf16.msra.mxu0 %v1049_v48 }
 0x1f9   :  { %1051 = vmatprep.subr.bf16.mxu0 %v1165_v0 }
 0x1fc   :  { %1053 = vmatpush3.bf16.msra.mxu0 %v1052_v51 }
 0x1fd   :  { %1054 = vmatprep.subr.bf16.mxu0 %v1165_v0 }
 0x200   :  { %1056 = vmatpush3.bf16.msra.mxu0 %v1055_v60 }
 0x2b6   :  { %v319_v53 = vpop.f32.mrb[2].mxu0 }
 0x2b7   :  { %v320_v54 = vadd.f32 %v672_v52, %v319_v53  ;;  %v849_v55 = vpop.f32.mrb[3].mxu0 }
 0x2b9   :  { %vm323_vm4 = vcmp.gt.f32.partialorder %v320_v54, 0.0  ;;  %v324_v56 = vmul.f32 0.2, %v320_v54 }
 0x2bb   :  { %v325_v57 = vsel %vm323_vm4, %v320_v54, %v324_v56 }
 0x2bc   :  { %883 = vmatmul.mubr.f32.vlgmr.msra.gmra.mrb[2].mxu1 %v325_v57 }
 0x2bd   :  { %952 = vmatprep.mubr.msk.f32.mxu1 %vm1166_vm0, %v1167_v1  ;;  %1059 = vmatpush3.bf16.msra.mxu1 %v1058_v2  ;;  %v529_v1 = vld [vmem:[#allocation5 + $0x2b0] sm:$0xff] }
 0x2be   :  { %1060 = vmatprep.subr.bf16.mxu1 %v1165_v0  ;;  %v1067_v9 = vpack.c.bf16 %v530_v8, %v529_v1 }
 0x2c1   :  { %1062 = vmatpush3.bf16.msra.mxu1 %v1061_v4 }
 0x2c2   :  { %1063 = vmatprep.subr.bf16.mxu1 %v1165_v0 }
 0x2c5   :  { %1065 = vmatpush3.bf16.msra.mxu1 %v1064_v7 }
 0x2c6   :  { %1066 = vmatprep.subr.bf16.mxu1 %v1165_v0 }
 0x2c9   :  { %1068 = vmatpush3.bf16.msra.mxu1 %v1067_v9 }
 0x2ca   :  { %1069 = vmatprep.subr.bf16.mxu1 %v1165_v0 }
 0x2cd   :  { %1071 = vmatpush3.bf16.msra.mxu1 %v1070_v12 }
 0x2ce   :  { %1072 = vmatprep.subr.bf16.mxu1 %v1165_v0 }
 0x2d1   :  { %1074 = vmatpush3.bf16.msra.mxu1 %v1073_v15 }
 0x2d2   :  { %1075 = vmatprep.subr.bf16.mxu1 %v1165_v0 }
 0x2d5   :  { %1077 = vmatpush3.bf16.msra.mxu1 %v1076_v18 }
 0x2d6   :  { %1078 = vmatprep.subr.bf16.mxu1 %v1165_v0 }
 0x2d9   :  { %1080 = vmatpush3.bf16.msra.mxu1 %v1079_v27 }
 0x38f   :  { %v417_v20 = vpop.f32.mrb[2].mxu1 }
 0x390   :  { %v418_v21 = vadd.f32 %v674_v19, %v417_v20  ;;  %v884_v22 = vpop.f32.mrb[3].mxu1 }
 0x392   :  { %vm421_vm5 = vcmp.gt.f32.partialorder %v418_v21, 0.0  ;;  %v422_v23 = vmul.f32 0.2, %v418_v21 }
 0x394   :  { %v423_v24 = vsel %vm421_vm5, %v418_v21, %v422_v23 }
 0x395   :  { %918 = vmatmul.mubr.f32.vlgmr.msra.gmra.mrb[4].mxu0 %v423_v24 }
 0x468   :  { %v515_v0 = vpop.f32.mrb[4].mxu0 }
 0x469   :  { %v516_v29 = vadd.f32 %v676_v28, %v515_v0  ;;  %v919_v30 = vpop.f32.mrb[5].mxu0 }
 0x46b   :  { %vm519_vm6 = vcmp.gt.f32.partialorder %v516_v29, 0.0  ;;  %v520_v31 = vmul.f32 0.2, %v516_v29 }
 0x46d   :  { %v521_v32 = vsel %vm519_vm6, %v516_v29, %v520_v31 }
 0x46e   :  { %953 = vmatmul.mubr.f32.vlgmr.msra.gmra.mrb[4].mxu1 %v521_v32 }
 0x541   :  { %v613_v34 = vpop.f32.mrb[4].mxu1 }
 0x542   :  { %v954_v35 = vpop.f32.mrb[5].mxu1  ;;  %v614_v36 = vadd.f32 %v678_v33, %v613_v34 }
 0x544   :  { %617 = vxpose.xlu0.b32.start.end [1/1] (short) (narrow) %v614_v36, 8 }
 0x5c4   :  { %v633_v37 = vpop.trf.xlu0 }
 0x5c5   :  { %650 = vst.msk [vmem:[#allocation7] sm:$0x1] %vm649_vm7, %v633_v37 }
 0x5c6   :  { %1144 = shalt.err (!%p1141_p6)
}
 0x5c7   :  { %s1145_s26 = scalar_lea.hbm %s1307_s3, 16 }
 0x5c8   :  { %p1146_p7 = scmp.ne.s32.totalorder %s1307_s3, %s1145_s26  ;;  %p1149_p8 = scmp.lt.u32.totalorder %s1145_s26, %s1307_s3 }
 0x5ca   :  { %p1151_p9 = pnand %p1149_p8, %p1146_p7 }
 0x5cc   :  { %1154 = shalt.err (!%p1151_p9)
}
 0x5cd   :  { %660 = dma.vmem_to_hbm [thread:$0]  %s658_s22, 16, %s1307_s3, [#allocation4]  }
 0x5ce   :  { %1159 = dma.done.wait [#allocation4], 16  }
 0x5cf   :  { %1160 = vsyncadd [#allocation4], 4294967280 }
 0x5d0   :  { %664 = vsyncpa [#allocation3], 1 }
 0x5d1   :  { %665 = vsyncpa [#allocation6], 1 }
 0x5d2   :  { %666 = vsyncpa [#allocation4], 1 }

</bundles_post_ra>
